<compile_context>
chip_gen: v6e
topology: v6e:2x2x1
jax: 0.10.0
libtpu: 0.0.40
codegen_flags: <defaults>
</compile_context>

<pallas_src>
import functools
import math

import jax
import jax.numpy as jnp
from jax.experimental import pallas as pl
from jax.experimental.pallas import tpu as pltpu


# ----------------------------------------------------------------------------
# Pallas kernels: fused conv matmul (per-batch block) with different epilogues
# ----------------------------------------------------------------------------
def _conv_in_lrelu_kernel(a_ref, w_ref, o_ref):
    # a: (HW, K) bf16, w: (K, Cout) bf16 -> conv, then InstanceNorm + LeakyReLU(0.2).
    # Conv bias is a per-channel constant -> exactly cancelled by IN mean subtraction.
    acc = jnp.dot(a_ref[0], w_ref[...], preferred_element_type=jnp.float32)
    mu = jnp.mean(acc, axis=0, keepdims=True)
    xc = acc - mu
    var = jnp.mean(xc * xc, axis=0, keepdims=True)       # biased var (PyTorch IN)
    y = xc * jax.lax.rsqrt(var + 1e-5)
    o_ref[0] = jnp.where(y >= 0.0, y, 0.2 * y)


def _conv_bias_kernel(a_ref, w_ref, b_ref, o_ref):
    acc = jnp.dot(a_ref[0], w_ref[...], preferred_element_type=jnp.float32)
    o_ref[0] = acc + b_ref[...]


def _conv_bias_tanh_kernel(a_ref, w_ref, b_ref, o_ref):
    acc = jnp.dot(a_ref[0], w_ref[...], preferred_element_type=jnp.float32)
    o_ref[0] = (jnp.tanh(acc + b_ref[...]) + 1.0) * 0.5


def _conv_matmul(a, w, bias, epilogue):
    # a: (B, M, K) bf16, w: (K, N) bf16, bias: (1, N) f32 -> (B, M, N) f32
    B, M, K = a.shape
    N = w.shape[1]
    if epilogue == "in_lrelu":
        kernel = _conv_in_lrelu_kernel
        in_specs = [
            pl.BlockSpec((1, M, K), lambda b: (b, 0, 0)),
            pl.BlockSpec((K, N), lambda b: (0, 0)),
        ]
        args = (a, w)
    else:
        kernel = _conv_bias_tanh_kernel if epilogue == "bias_tanh" else _conv_bias_kernel
        in_specs = [
            pl.BlockSpec((1, M, K), lambda b: (b, 0, 0)),
            pl.BlockSpec((K, N), lambda b: (0, 0)),
            pl.BlockSpec((1, N), lambda b: (0, 0)),
        ]
        args = (a, w, bias)
    return pl.pallas_call(
        kernel,
        out_shape=jax.ShapeDtypeStruct((B, M, N), jnp.float32),
        grid_spec=pltpu.PrefetchScalarGridSpec(
            num_scalar_prefetch=0,
            grid=(B,),
            in_specs=in_specs,
            out_specs=pl.BlockSpec((1, M, N), lambda b: (b, 0, 0)),
        ),
        compiler_params=pltpu.CompilerParams(
            dimension_semantics=("parallel",),
            # real footprint (double-buffered) maxes at ~13 MiB; 32 MiB is safe on
            # v5e/v6e (128 MiB) and within v7x's 64 MiB physical VMEM.
            vmem_limit_bytes=32 * 1024 * 1024,
        ),
    )(*args)


# ----------------------------------------------------------------------------
# Pallas kernel: standalone InstanceNorm + LeakyReLU (decoder: after pixel-shuffle)
# channels-last (B, HW, C): C on lanes, per-batch grid, per-(b,c) reduce over rows.
# ----------------------------------------------------------------------------
def _in_lrelu_kernel(x_ref, o_ref):
    x = x_ref[0]                                          # (HW, C) f32
    mu = jnp.mean(x, axis=0, keepdims=True)
    xc = x - mu
    var = jnp.mean(xc * xc, axis=0, keepdims=True)
    y = xc * jax.lax.rsqrt(var + 1e-5)
    o_ref[0] = jnp.where(y >= 0.0, y, 0.2 * y)


@jax.jit
def instance_norm_lrelu(x):
    B, H, W, C = x.shape
    xr = x.reshape(B, H * W, C)
    out = pl.pallas_call(
        _in_lrelu_kernel,
        out_shape=jax.ShapeDtypeStruct(xr.shape, jnp.float32),
        grid_spec=pltpu.PrefetchScalarGridSpec(
            num_scalar_prefetch=0,
            grid=(B,),
            in_specs=[pl.BlockSpec((1, H * W, C), lambda b: (b, 0, 0))],
            out_specs=pl.BlockSpec((1, H * W, C), lambda b: (b, 0, 0)),
        ),
        compiler_params=pltpu.CompilerParams(dimension_semantics=("parallel",)),
    )(xr)
    return out.reshape(B, H, W, C)


# ----------------------------------------------------------------------------
# Pallas kernel: Comp_Attn core.  energy = [rq|cq] @ [rk|ck]^T (single K=2d matmul),
# softmax, attn @ V, gamma residual.  Attention matrix is never written to HBM.
# ----------------------------------------------------------------------------
def _comp_attn_kernel(gamma_ref, q_ref, k_ref, v_ref, x_ref, o_ref):
    gamma = gamma_ref[0, 0]
    q = q_ref[0]                                          # (n, 2d)
    k = k_ref[0]                                          # (n, 2d)
    energy = jax.lax.dot_general(q, k, (((1,), (1,)), ((), ())),
                                 preferred_element_type=jnp.float32)
    m = jnp.max(energy, axis=-1, keepdims=True)
    e = jnp.exp(energy - m)
    attn = e / jnp.sum(e, axis=-1, keepdims=True)
    out = jnp.dot(attn, v_ref[0], preferred_element_type=jnp.float32)  # (n, C)
    o_ref[0] = gamma * out + x_ref[0]


def _comp_attn_core(gamma, qcat, kcat, v, xf):
    B, n, dd = qcat.shape
    C = v.shape[2]
    return pl.pallas_call(
        _comp_attn_kernel,
        out_shape=jax.ShapeDtypeStruct((B, n, C), jnp.float32),
        grid_spec=pltpu.PrefetchScalarGridSpec(
            num_scalar_prefetch=0,
            grid=(B,),
            in_specs=[
                pl.BlockSpec((1, 1), lambda i: (0, 0)),
                pl.BlockSpec((1, n, dd), lambda i: (i, 0, 0)),
                pl.BlockSpec((1, n, dd), lambda i: (i, 0, 0)),
                pl.BlockSpec((1, n, C), lambda i: (i, 0, 0)),
                pl.BlockSpec((1, n, C), lambda i: (i, 0, 0)),
            ],
            out_specs=pl.BlockSpec((1, n, C), lambda i: (i, 0, 0)),
        ),
        compiler_params=pltpu.CompilerParams(dimension_semantics=("parallel",)),
    )(gamma, qcat, kcat, v, xf)


# ----------------------------------------------------------------------------
# Conv2d (NHWC) = im2col glue (skipped for 1x1/s1/p0) + fused Pallas matmul kernel.
# ----------------------------------------------------------------------------
@functools.partial(jax.jit, static_argnames=("stride", "pad", "epilogue"))
def conv2d(x, w, b, *, stride=1, pad=0, epilogue="bias"):
    # x: (B, H, W, Cin); w: (Cout, Cin, kh, kw) [PyTorch layout]; b: (Cout,)
    B, H, W, Cin = x.shape
    Cout, _, kh, kw = w.shape
    Ho = (H + 2 * pad - kh) // stride + 1
    Wo = (W + 2 * pad - kw) // stride + 1
    if kh == 1 and kw == 1 and stride == 1 and pad == 0:
        a = x.reshape(B, H * W, Cin)
    else:
        # TODO(synk): im2col materializes kh*kw shifted copies; fine at these sizes,
        # a kh*kw reduction grid axis would avoid it at real resolutions.
        xp = jnp.pad(x, ((0, 0), (pad, pad), (pad, pad), (0, 0)))
        cols = []
        for i in range(kh):
            for j in range(kw):
                cols.append(xp[:, i:i + stride * Ho:stride, j:j + stride * Wo:stride, :])
        patches = jnp.concatenate(cols, axis=-1)          # (B, Ho, Wo, kh*kw*Cin)
        a = patches.reshape(B, Ho * Wo, kh * kw * Cin)
    wm = jnp.transpose(w, (2, 3, 1, 0)).reshape(kh * kw * Cin, Cout)
    a = a.astype(jnp.bfloat16)
    wm = wm.astype(jnp.bfloat16)
    bias = b.reshape(1, Cout).astype(jnp.float32)
    out = _conv_matmul(a, wm, bias, epilogue)             # (B, Ho*Wo, Cout) f32
    return out.reshape(B, Ho, Wo, Cout)


def conv_in_lrelu(x, p, stride, pad):
    return conv2d(x, p["w"], p["b"], stride=stride, pad=pad, epilogue="in_lrelu")


def pixel_shuffle_nhwc(x, r):
    # PyTorch PixelShuffle semantics, NHWC layout.
    B, H, W, C = x.shape
    Co = C // (r * r)
    x = x.reshape(B, H, W, Co, r, r)
    x = x.transpose(0, 1, 4, 2, 5, 3)                     # (B, H, r, W, r, Co)
    return x.reshape(B, H * r, W * r, Co)


@jax.jit
def se_gate(x, fc1, fc2):
    # TODO(synk): SE gate (global avg-pool + two FCs on B rows) kept in plain jnp;
    # an MXU kernel would use <1% of its rows -> pure launch overhead.
    B, H, W, C = x.shape
    y = jnp.mean(x, axis=(1, 2))                          # (B, C)
    w1 = fc1["w"].reshape(fc1["w"].shape[0], C)
    y = jnp.maximum(y @ w1.T + fc1["b"], 0.0)
    w2 = fc2["w"].reshape(C, -1)
    y = jax.nn.sigmoid(y @ w2.T + fc2["b"])
    return y[:, None, None, :]                            # (B, 1, 1, C)


# ----------------------------------------------------------------------------
# Module forwards (channels-last)
# ----------------------------------------------------------------------------
@jax.jit
def msfb_forward(p, x):
    x_1 = conv_in_lrelu(x, p["conv_1"], 1, 0)
    x_3 = conv_in_lrelu(x, p["conv_3"], 1, 1)
    x_5 = conv_in_lrelu(x, p["conv_5"], 1, 2)
    x_7 = conv_in_lrelu(x, p["conv_7"], 1, 3)
    x_13 = conv_in_lrelu(jnp.concatenate([x_1, x_3], -1), p["conv_mid"], 1, 1)
    x_5 = conv_in_lrelu(x_5, p["conv_1_1"], 1, 0)
    x_135 = conv_in_lrelu(jnp.concatenate([x_13, x_5], -1), p["conv_mid_1"], 1, 1)
    x_7 = conv_in_lrelu(x_7, p["conv_1_2"], 1, 0)
    x_1357 = conv_in_lrelu(jnp.concatenate([x_135, x_7], -1), p["conv_mid_2"], 1, 1)
    y_mid = jnp.concatenate([x_1, x_13, x_135, x_1357], -1)
    y_mid = conv_in_lrelu(y_mid, p["conv_last"], 1, 0)
    y = se_gate(x, p["fc1"], p["fc2"])
    return x + y_mid * y


def gdb_forward(p, x):
    x_1 = msfb_forward(p["b1"], x)
    x_2 = msfb_forward(p["b2"], x + x_1)
    x_3 = msfb_forward(p["b3"], x + x_1 + x_2)
    x_4 = msfb_forward(p["b4"], x + x_1 + x_2 + x_3)
    y_mid = conv_in_lrelu(jnp.concatenate([x_1, x_2, x_3, x_4], -1), p["fuse"], 1, 0)
    y = se_gate(x, p["fc1"], p["fc2"])
    return x + y_mid * y


@jax.jit
def comp_attn_forward(p, x):
    # x: (B, H, W, C) channels-last.  Returns out only (attention matrix is discarded
    # by G_Net, so we never materialize it in HBM).
    B, H, W, C = x.shape
    n = H * W
    xf = x.reshape(B, n, C)
    pq = conv2d(x, p["q_conv"]["w"], p["q_conv"]["b"], epilogue="bias")
    pk = conv2d(x, p["k_conv"]["w"], p["k_conv"]["b"], epilogue="bias")
    pv = conv2d(x, p["v_conv"]["w"], p["v_conv"]["b"], epilogue="bias")
    rq = conv2d(pq, p["com_conv_1"]["w"], p["com_conv_1"]["b"], epilogue="bias")
    cq = conv2d(pq, p["com_conv_2"]["w"], p["com_conv_2"]["b"], epilogue="bias")
    rk = conv2d(pk, p["com_conv_3"]["w"], p["com_conv_3"]["b"], epilogue="bias")
    ck = conv2d(pk, p["com_conv_4"]["w"], p["com_conv_4"]["b"], epilogue="bias")
    d = rq.shape[-1]
    qcat = jnp.concatenate([rq.reshape(B, n, d), cq.reshape(B, n, d)], axis=-1)
    kcat = jnp.concatenate([rk.reshape(B, n, d), ck.reshape(B, n, d)], axis=-1)
    out = _comp_attn_core(p["gamma"], qcat, kcat, pv.reshape(B, n, C), xf)
    return out.reshape(B, H, W, C)


def g_net_forward(params, x, mask):
    # x, mask in NCHW (PyTorch convention) -> single transpose to NHWC at entry/exit.
    x = x * (1.0 - mask) + mask
    h = jnp.concatenate([x, mask], axis=1)                # (B, Cin+1, H, W)
    h = jnp.transpose(h, (0, 2, 3, 1))                    # NHWC
    # encoder
    h = conv_in_lrelu(h, params["encoder_1"], 1, 3)
    h = conv_in_lrelu(h, params["encoder_2"], 2, 1)
    h = conv_in_lrelu(h, params["encoder_3"], 2, 1)
    h = conv_in_lrelu(h, params["encoder_4"], 2, 1)
    # middle: 4 GDB blocks
    for gp in params["middle"]:
        h = gdb_forward(gp, h)
    # attention
    h = comp_attn_forward(params["attention"], h)
    # decoder (conv+bias -> pixel shuffle -> IN+LReLU)
    h = conv2d(h, params["decoder_1"]["w"], params["decoder_1"]["b"],
               stride=1, pad=1, epilogue="bias")
    h = instance_norm_lrelu(pixel_shuffle_nhwc(h, 2))
    h = conv2d(h, params["decoder_2"]["w"], params["decoder_2"]["b"],
               stride=1, pad=1, epilogue="bias")
    h = instance_norm_lrelu(pixel_shuffle_nhwc(h, 2))
    h = conv2d(h, params["decoder_3"]["w"], params["decoder_3"]["b"],
               stride=1, pad=1, epilogue="bias")
    h = instance_norm_lrelu(pixel_shuffle_nhwc(h, 2))
    # final conv with fused (tanh(x)+1)/2 epilogue
    h = conv2d(h, params["decoder_4"]["w"], params["decoder_4"]["b"],
               stride=1, pad=3, epilogue="bias_tanh")
    return jnp.transpose(h, (0, 3, 1, 2))                 # back to NCHW


# ----------------------------------------------------------------------------
# Deterministic parameter init (PyTorch-like uniform(+-1/sqrt(fan_in)))
# ----------------------------------------------------------------------------
class KeyGen:
    def __init__(self, seed):
        self.key = jax.random.PRNGKey(seed)

    def __call__(self):
        self.key, sub = jax.random.split(self.key)
        return sub


def init_conv(kg, cin, cout, k):
    fan_in = cin * k * k
    bound = 1.0 / math.sqrt(fan_in)
    w = jax.random.uniform(kg(), (cout, cin, k, k), jnp.float32, -bound, bound)
    b = jax.random.uniform(kg(), (cout,), jnp.float32, -bound, bound)
    return {"w": w, "b": b}


def init_msfb(kg, c, reduction=16):
    return {
        "conv_1": init_conv(kg, c, c, 1),
        "conv_3": init_conv(kg, c, c, 3),
        "conv_5": init_conv(kg, c, c, 5),
        "conv_7": init_conv(kg, c, c, 7),
        "conv_1_1": init_conv(kg, c, c, 1),
        "conv_1_2": init_conv(kg, c, c, 1),
        "conv_mid": init_conv(kg, 2 * c, c, 3),
        "conv_mid_1": init_conv(kg, 2 * c, c, 3),
        "conv_mid_2": init_conv(kg, 2 * c, c, 3),
        "conv_last": init_conv(kg, 4 * c, c, 1),
        "fc1": init_conv(kg, c, c // reduction, 1),
        "fc2": init_conv(kg, c // reduction, c, 1),
    }


def init_gdb(kg, c, reduction=16):
    return {
        "b1": init_msfb(kg, c),
        "b2": init_msfb(kg, c),
        "b3": init_msfb(kg, c),
        "b4": init_msfb(kg, c),
        "fuse": init_conv(kg, 4 * c, c, 1),
        "fc1": init_conv(kg, c, c // reduction, 1),
        "fc2": init_conv(kg, c // reduction, c, 1),
    }


def init_comp_attn(kg, c):
    return {
        "q_conv": init_conv(kg, c, c // 8, 1),
        "k_conv": init_conv(kg, c, c // 8, 1),
        "v_conv": init_conv(kg, c, c, 1),
        "com_conv_1": init_conv(kg, c // 8, c // 8, 1),
        "com_conv_2": init_conv(kg, c // 8, c // 8, 1),
        "com_conv_3": init_conv(kg, c // 8, c // 8, 1),
        "com_conv_4": init_conv(kg, c // 8, c // 8, 1),
        "gamma": jnp.zeros((1, 1), jnp.float32),
    }


def init_g_net(kg, input_channels=3):
    return {
        "encoder_1": init_conv(kg, input_channels + 1, 64, 7),
        "encoder_2": init_conv(kg, 64, 128, 4),
        "encoder_3": init_conv(kg, 128, 256, 4),
        "encoder_4": init_conv(kg, 256, 256, 4),
        "middle": [init_gdb(kg, 256) for _ in range(4)],
        "decoder_1": init_conv(kg, 256, 256 * 4, 3),
        "decoder_2": init_conv(kg, 256, 128 * 4, 3),
        "decoder_3": init_conv(kg, 128, 64 * 4, 3),
        "decoder_4": init_conv(kg, 64, 3, 7),
        "attention": init_comp_attn(kg, 256),
    }


if __name__ == "__main__":
    B, H, W = 1, 16, 16
    key = jax.random.PRNGKey(0)
    kx, km = jax.random.split(key)
    x = jax.random.uniform(kx, (B, 3, H, W), jnp.float32)
    mask = (jax.random.uniform(km, (B, 1, H, W)) > 0.5).astype(jnp.float32)

    params = init_g_net(KeyGen(42), input_channels=3)

    out = g_net_forward(params, x, mask)
    out = jax.block_until_ready(out)
    assert out.shape == (B, 3, H, W), out.shape
    assert bool(jnp.all(jnp.isfinite(out)))
    print("KERNEL_OK")
</pallas_src>

<mosaic_0001>
module attributes {stable_mosaic.version = 11 : i64} {
  func.func @_conv_in_lrelu_kernel(%arg0: i32, %arg1: memref<1x256x196xbf16, #tpu.memory_space<vmem>>, %arg2: memref<196x64xbf16, #tpu.memory_space<vmem>>, %arg3: memref<1x256x64xf32, #tpu.memory_space<vmem>>) attributes {dimension_semantics = [#tpu.dimension_semantics<parallel>], iteration_bounds = array<i64: 1>, scalar_prefetch = 0 : i64, scratch_operands = 0 : i64, tpu.core_type = #tpu.core_type<tc>, window_params = [{transform_indices = @transform_0, window_bounds = array<i64: 1, 256, 196>}, {pipeline_mode = #tpu.pipeline_mode<synchronous>, transform_indices = @transform_1, window_bounds = array<i64: 196, 64>}, {transform_indices = @transform_2, window_bounds = array<i64: 1, 256, 64>}]} {
    %c0 = arith.constant 0 : index
    %c0_0 = arith.constant 0 : index
    %c0_1 = arith.constant 0 : index
    %0 = vector.load %arg1[%c0, %c0_0, %c0_1] : memref<1x256x196xbf16, #tpu.memory_space<vmem>>, vector<1x256x196xbf16>
    %1 = vector.shape_cast %0 : vector<1x256x196xbf16> to vector<256x196xbf16>
    %c0_2 = arith.constant 0 : index
    %c0_3 = arith.constant 0 : index
    %2 = vector.load %arg2[%c0_2, %c0_3] : memref<196x64xbf16, #tpu.memory_space<vmem>>, vector<196x64xbf16>
    %cst = arith.constant dense<0.000000e+00> : vector<256x64xf32>
    %3 = tpu.matmul %1, %2, %cst {dimension_numbers = #tpu.dot_dimension_numbers<[1], [0], [0], [1], [0, 0, 1, 1], [], []>} : vector<256x196xbf16>, vector<196x64xbf16>, vector<256x64xf32> -> vector<256x64xf32>
    %cst_4 = arith.constant dense<0.000000e+00> : vector<64xf32>
    %4 = vector.multi_reduction <add>, %3, %cst_4 [0] : vector<256x64xf32> to vector<64xf32>
    %5 = vector.shape_cast %4 : vector<64xf32> to vector<1x64xf32>
    %cst_5 = arith.constant 2.560000e+02 : f32
    %6 = vector.broadcast %cst_5 : f32 to vector<1x64xf32>
    %7 = arith.divf %5, %6 : vector<1x64xf32>
    %8 = vector.broadcast %7 : vector<1x64xf32> to vector<256x64xf32>
    %9 = arith.subf %3, %8 : vector<256x64xf32>
    %10 = arith.mulf %9, %9 : vector<256x64xf32>
    %cst_6 = arith.constant dense<0.000000e+00> : vector<64xf32>
    %11 = vector.multi_reduction <add>, %10, %cst_6 [0] : vector<256x64xf32> to vector<64xf32>
    %12 = vector.shape_cast %11 : vector<64xf32> to vector<1x64xf32>
    %cst_7 = arith.constant 2.560000e+02 : f32
    %13 = vector.broadcast %cst_7 : f32 to vector<1x64xf32>
    %14 = arith.divf %12, %13 : vector<1x64xf32>
    %cst_8 = arith.constant 9.99999974E-6 : f32
    %15 = vector.broadcast %cst_8 : f32 to vector<1x64xf32>
    %16 = arith.addf %14, %15 : vector<1x64xf32>
    %17 = math.rsqrt %16 : vector<1x64xf32>
    %18 = vector.broadcast %17 : vector<1x64xf32> to vector<256x64xf32>
    %19 = arith.mulf %9, %18 : vector<256x64xf32>
    %cst_9 = arith.constant 0.000000e+00 : f32
    %20 = vector.broadcast %cst_9 : f32 to vector<256x64xf32>
    %21 = arith.cmpf oge, %19, %20 : vector<256x64xf32>
    %cst_10 = arith.constant 2.000000e-01 : f32
    %22 = vector.broadcast %cst_10 : f32 to vector<256x64xf32>
    %23 = arith.mulf %22, %19 : vector<256x64xf32>
    %24 = arith.select %21, %19, %23 : vector<256x64xi1>, vector<256x64xf32>
    %c0_11 = arith.constant 0 : index
    %c0_12 = arith.constant 0 : index
    %c0_13 = arith.constant 0 : index
    %25 = vector.load %arg3[%c0_11, %c0_12, %c0_13] : memref<1x256x64xf32, #tpu.memory_space<vmem>>, vector<1x256x64xf32>
    %26 = vector.shape_cast %25 : vector<1x256x64xf32> to vector<256x64xf32>
    %27 = vector.shape_cast %24 : vector<256x64xf32> to vector<1x256x64xf32>
    tpu.vector_store %arg3[%c0_11, %c0_12, %c0_13], %27 {strides = array<i32>} : memref<1x256x64xf32, #tpu.memory_space<vmem>>, vector<1x256x64xf32>,
    return
  }
  func.func @transform_0(%arg0: i32) -> (i32, i32, i32) {
    %c0_i32 = arith.constant 0 : i32
    %c0_i32_0 = arith.constant 0 : i32
    %c0_i32_1 = arith.constant 0 : i32
    return %arg0, %c0_i32, %c0_i32_0 : i32, i32, i32
  }
  func.func @transform_1(%arg0: i32) -> (i32, i32) {
    %c0_i32 = arith.constant 0 : i32
    %c0_i32_0 = arith.constant 0 : i32
    %c0_i32_1 = arith.constant 0 : i32
    return %c0_i32, %c0_i32_0 : i32, i32
  }
  func.func @transform_2(%arg0: i32) -> (i32, i32, i32) {
    %c0_i32 = arith.constant 0 : i32
    %c0_i32_0 = arith.constant 0 : i32
    %c0_i32_1 = arith.constant 0 : i32
    return %arg0, %c0_i32, %c0_i32_0 : i32, i32, i32
  }
}

</mosaic_0001>

<bundles_post_ra>
// kernel: conv2d.1
= control target key start
LH: loop header
LB: loop body
LE: loop exit
PB: predicated region body
PF: predicated region fallthrough
CT: control target
= control target key end

     0   :  { %v1063_v1 = vmov 0   ;;  %vm289_vm0 = vcmask 556032   ;;  %vm338_vm1 = vcmask 1041408   ;;  %s1886_s0 = inlined_call_operand.vmem [shape: bf16[1,256,196], index: 0, kind: input, shape index: {}]   ;;  %s1887_s1 = inlined_call_operand.vmem [shape: bf16[196,64], index: 1, kind: input, shape index: {}]   ;;  %s1888_s2 = inlined_call_operand.hbm [shape: f32[1,256,64], index: 2, kind: output, shape index: {}]  }
   0x1   :  { %v978_v0 = vld [vmem:[%s1887_s1 + $0x38] sm:$0xff]   ;;  %342 = vmatprep.subr.bf16.mxu0 %v1063_v1  ;;  %948 = vmatprep.subr.bf16.mxu1 %v1063_v1  ;;  %v979_v2 = vld [vmem:[%s1887_s1 + $0x30] sm:$0xff]   ;;  %v980_v3 = vld [vmem:[%s1887_s1 + $0x28] sm:$0xff]  }
   0x2   :  { %343 = vmatpush1.bf16.msra.mxu0 %v978_v0  ;;  %961 = vmatpush1.bf16.msra.mxu1 %v978_v0  ;;  %v981_v4 = vld [vmem:[%s1887_s1 + $0x20] sm:$0xff]   ;;  %v982_v6 = vld [vmem:[%s1887_s1 + $0x18] sm:$0xff]   ;;  %v983_v7 = vld [vmem:[%s1887_s1 + $0x10] sm:$0xff]  }
   0x3   :  { %344 = vmatprep.subr.bf16.mxu0 %v1063_v1  ;;  %949 = vmatprep.subr.bf16.mxu1 %v1063_v1  ;;  %v993_v5 = vld [vmem:[%s1886_s0 + $0x4] ss:$8 sps:$4 sm:$0xff]   ;;  %v986_v11 = vld [vmem:[%s1887_s1 + $0x60] ss:$0 sps:$4 sm:$0x33]   ;;  %v987_v13 = vld [vmem:[%s1887_s1 + $0x58] sm:$0xff]  }
   0x4   :  { %932 = vmatprep.mubr.msk.bf16.mxu0 %vm289_vm0, %v993_v5  ;;  %v1005_v8 = vld [vmem:[%s1886_s0 + $0x84] ss:$8 sps:$4 sm:$0xff]   ;;  %v340_v12 = vsel %vm338_vm1, %v986_v11, 0 }
   0x5   :  { %940 = vmatprep.mubr.msk.bf16.mxu1 %vm289_vm0, %v1005_v8  ;;  %v984_v9 = vld [vmem:[%s1887_s1 + $0x8] sm:$0xff]   ;;  %v985_v10 = vld [vmem:[%s1887_s1] sm:$0xff]  }
   0x6   :  { %345 = vmatpush1.bf16.msra.mxu0 %v979_v2  ;;  %962 = vmatpush1.bf16.msra.mxu1 %v979_v2 }
   0x7   :  { %346 = vmatprep.subr.bf16.mxu0 %v1063_v1  ;;  %950 = vmatprep.subr.bf16.mxu1 %v1063_v1 }
   0xa   :  { %347 = vmatpush1.bf16.msra.mxu0 %v980_v3  ;;  %963 = vmatpush1.bf16.msra.mxu1 %v980_v3 }
   0xb   :  { %348 = vmatprep.subr.bf16.mxu0 %v1063_v1  ;;  %951 = vmatprep.subr.bf16.mxu1 %v1063_v1 }
   0xe   :  { %349 = vmatpush1.bf16.msra.mxu0 %v981_v4  ;;  %964 = vmatpush1.bf16.msra.mxu1 %v981_v4 }
   0xf   :  { %350 = vmatprep.subr.bf16.mxu0 %v1063_v1  ;;  %952 = vmatprep.subr.bf16.mxu1 %v1063_v1 }
  0x12   :  { %351 = vmatpush1.bf16.msra.mxu0 %v982_v6  ;;  %965 = vmatpush1.bf16.msra.mxu1 %v982_v6 }
  0x13   :  { %352 = vmatprep.subr.bf16.mxu0 %v1063_v1  ;;  %953 = vmatprep.subr.bf16.mxu1 %v1063_v1 }
  0x16   :  { %353 = vmatpush1.bf16.msra.mxu0 %v983_v7  ;;  %966 = vmatpush1.bf16.msra.mxu1 %v983_v7 }
  0x17   :  { %354 = vmatprep.subr.bf16.mxu0 %v1063_v1  ;;  %954 = vmatprep.subr.bf16.mxu1 %v1063_v1 }
  0x1a   :  { %355 = vmatpush1.bf16.msra.mxu0 %v984_v9  ;;  %967 = vmatpush1.bf16.msra.mxu1 %v984_v9 }
  0x1b   :  { %356 = vmatprep.subr.bf16.mxu0 %v1063_v1  ;;  %955 = vmatprep.subr.bf16.mxu1 %v1063_v1 }
  0x1e   :  { %357 = vmatpush1.bf16.msra.mxu0 %v985_v10  ;;  %968 = vmatpush1.bf16.msra.mxu1 %v985_v10 }
  0x1f   :  { %364 = vmatprep.subr.bf16.mxu0 %v1063_v1  ;;  %956 = vmatprep.subr.bf16.mxu1 %v1063_v1 }
  0x22   :  { %365 = vmatpush2.bf16.msra.mxu0 %v340_v12  ;;  %969 = vmatpush2.bf16.msra.mxu1 %v340_v12 }
  0x23   :  { %7 = vsyncpa [#allocation3], 0  ;;  %366 = vmatprep.subr.bf16.mxu0 %v1063_v1  ;;  %957 = vmatprep.subr.bf16.mxu1 %v1063_v1  ;;  %v988_v14 = vld [vmem:[%s1887_s1 + $0x50] sm:$0xff]   ;;  %v989_v15 = vld [vmem:[%s1887_s1 + $0x48] sm:$0xff]   ;;  %vm503_vm2 = vcmask 523264  }
  0x24   :  { %v990_v16 = vld [vmem:[%s1887_s1 + $0x40] sm:$0xff]   ;;  %v994_v19 = vld [vmem:[%s1886_s0 + $0x14] ss:$8 sps:$4 sm:$0xff]   ;;  %v996_v21 = vld [vmem:[%s1886_s0 + $0x10] ss:$8 sps:$4 sm:$0xff]  }
  0x25   :  { %v991_v17 = vld [vmem:[%s1886_s0] ss:$8 sps:$4 sm:$0xff]   ;;  %v1009_v20 = vld [vmem:[%s1886_s0 + $0x94] ss:$8 sps:$4 sm:$0xff]   ;;  %v1011_v22 = vld [vmem:[%s1886_s0 + $0x90] ss:$8 sps:$4 sm:$0xff]  }
  0x26   :  { %367 = vmatpush2.bf16.msra.mxu0 %v987_v13  ;;  %970 = vmatpush2.bf16.msra.mxu1 %v987_v13  ;;  %v1003_v18 = vld [vmem:[%s1886_s0 + $0x80] ss:$8 sps:$4 sm:$0xff]   ;;  %v997_v23 = vld [vmem:[%s1886_s0 + $0x24] ss:$8 sps:$4 sm:$0xff]   ;;  %v1000_v27 = vld [vmem:[%s1886_s0 + $0x34] ss:$8 sps:$4 sm:$0xff]  }
  0x27   :  { %368 = vmatprep.subr.bf16.mxu0 %v1063_v1  ;;  %958 = vmatprep.subr.bf16.mxu1 %v1063_v1  ;;  %v1015_v24 = vld [vmem:[%s1886_s0 + $0xa4] ss:$8 sps:$4 sm:$0xff]   ;;  %v999_v25 = vld [vmem:[%s1886_s0 + $0x20] ss:$8 sps:$4 sm:$0xff]   ;;  %v1021_v28 = vld [vmem:[%s1886_s0 + $0xb4] ss:$8 sps:$4 sm:$0xff]  }
  0x28   :  { %v1017_v26 = vld [vmem:[%s1886_s0 + $0xa0] ss:$8 sps:$4 sm:$0xff]   ;;  %v1002_v29 = vld [vmem:[%s1886_s0 + $0x30] ss:$8 sps:$4 sm:$0xff]   ;;  %v1006_v31 = vld [vmem:[%s1886_s0 + $0x44] ss:$8 sps:$4 sm:$0xff]  }
  0x29   :  { %v1023_v30 = vld [vmem:[%s1886_s0 + $0xb0] ss:$8 sps:$4 sm:$0xff]   ;;  %v1027_v32 = vld [vmem:[%s1886_s0 + $0xc4] ss:$8 sps:$4 sm:$0xff]   ;;  %v1008_v33 = vld [vmem:[%s1886_s0 + $0x40] ss:$8 sps:$4 sm:$0xff]  }
  0x2a   :  { %369 = vmatpush2.bf16.msra.mxu0 %v988_v14  ;;  %971 = vmatpush2.bf16.msra.mxu1 %v988_v14  ;;  %v1029_v34 = vld [vmem:[%s1886_s0 + $0xc0] ss:$8 sps:$4 sm:$0xff]   ;;  %v1012_v35 = vld [vmem:[%s1886_s0 + $0x54] ss:$8 sps:$4 sm:$0xff]   ;;  %v1014_v37 = vld [vmem:[%s1886_s0 + $0x50] ss:$8 sps:$4 sm:$0xff]  }
  0x2b   :  { %370 = vmatprep.subr.bf16.mxu0 %v1063_v1  ;;  %959 = vmatprep.subr.bf16.mxu1 %v1063_v1  ;;  %v1030_v36 = vld [vmem:[%s1886_s0 + $0xd4] ss:$8 sps:$4 sm:$0xff]   ;;  %v1032_v38 = vld [vmem:[%s1886_s0 + $0xd0] ss:$8 sps:$4 sm:$0xff]   ;;  %v1018_v39 = vld [vmem:[%s1886_s0 + $0x64] ss:$8 sps:$4 sm:$0xff]  }
  0x2c   :  { %v1033_v40 = vld [vmem:[%s1886_s0 + $0xe4] ss:$8 sps:$4 sm:$0xff]   ;;  %v1020_v41 = vld [vmem:[%s1886_s0 + $0x60] ss:$8 sps:$4 sm:$0xff]   ;;  %v1024_v43 = vld [vmem:[%s1886_s0 + $0x74] ss:$8 sps:$4 sm:$0xff]  }
  0x2d   :  { %v1035_v42 = vld [vmem:[%s1886_s0 + $0xe0] ss:$8 sps:$4 sm:$0xff]   ;;  %v1036_v44 = vld [vmem:[%s1886_s0 + $0xf4] ss:$8 sps:$4 sm:$0xff]   ;;  %v1026_v45 = vld [vmem:[%s1886_s0 + $0x70] ss:$8 sps:$4 sm:$0xff]  }
  0x2e   :  { %371 = vmatpush2.bf16.msra.mxu0 %v989_v15  ;;  %972 = vmatpush2.bf16.msra.mxu1 %v989_v15  ;;  %v1038_v46 = vld [vmem:[%s1886_s0 + $0xf0] ss:$8 sps:$4 sm:$0xff]   ;;  %s1064_s0 = smov [#allocation2]  }
  0x2f   :  { %372 = vmatprep.subr.bf16.mxu0 %v1063_v1  ;;  %960 = vmatprep.subr.bf16.mxu1 %v1063_v1  ;;  %s876_s13 = sshll.u32 %s1064_s0, 4  ;;  %s877_s13 = int_to_ptr.vmem [resolvable:$true] %s876_s13 }
  0x30   :  { %s1041_s14 = scalar_lea.vmem %s877_s13, 4096  ;;  %p1046_p1 = scmp.lt.s32.totalorder %s877_s13, %s877_s13 }
  0x31   :  { %p1042_p0 = scmp.ne.s32.totalorder %s877_s13, %s1041_s14  ;;  %p1047_p2 = scmp.lt.s32.totalorder %s1041_s14, %s1041_s14 }
  0x32   :  { %373 = vmatpush2.bf16.msra.mxu0 %v990_v16  ;;  %973 = vmatpush2.bf16.msra.mxu1 %v990_v16 }
  0x33   :  { %p1048_p3 = por %p1047_p2, %p1046_p1 }
  0x35   :  { %375 = vmatmul.mubr.bf16.vlgmr.msra.gmra.mxu0 %v991_v17  ;;  %439 = vmatmul.mubr.bf16.vlgmr.msra.gmra.mxu1 %v1003_v18  ;;  %p1049_p4 = pnand %p1048_p3, %p1042_p0 }
  0x36   :  { %933 = vmatprep.mubr.msk.bf16.mxu0 %vm289_vm0, %v994_v19  ;;  %941 = vmatprep.mubr.msk.bf16.mxu1 %vm289_vm0, %v1009_v20 }
  0x3d   :  { %383 = vmatmul.mubr.bf16.gmra.mxu0 %v996_v21  ;;  %447 = vmatmul.mubr.bf16.gmra.mxu1 %v1011_v22 }
  0x3e   :  { %934 = vmatprep.mubr.msk.bf16.mxu0 %vm289_vm0, %v997_v23  ;;  %942 = vmatprep.mubr.msk.bf16.mxu1 %vm289_vm0, %v1015_v24 }
  0x45   :  { %391 = vmatmul.mubr.bf16.gmra.mxu0 %v999_v25  ;;  %455 = vmatmul.mubr.bf16.gmra.mxu1 %v1017_v26 }
  0x46   :  { %935 = vmatprep.mubr.msk.bf16.mxu0 %vm289_vm0, %v1000_v27  ;;  %943 = vmatprep.mubr.msk.bf16.mxu1 %vm289_vm0, %v1021_v28 }
  0x4d   :  { %399 = vmatmul.mubr.bf16.gmra.mxu0 %v1002_v29  ;;  %463 = vmatmul.mubr.bf16.gmra.mxu1 %v1023_v30 }
  0x4e   :  { %936 = vmatprep.mubr.msk.bf16.mxu0 %vm289_vm0, %v1006_v31  ;;  %944 = vmatprep.mubr.msk.bf16.mxu1 %vm289_vm0, %v1027_v32 }
  0x55   :  { %407 = vmatmul.mubr.bf16.gmra.mxu0 %v1008_v33  ;;  %471 = vmatmul.mubr.bf16.gmra.mxu1 %v1029_v34 }
  0x56   :  { %937 = vmatprep.mubr.msk.bf16.mxu0 %vm289_vm0, %v1012_v35  ;;  %945 = vmatprep.mubr.msk.bf16.mxu1 %vm289_vm0, %v1030_v36 }
  0x5d   :  { %415 = vmatmul.mubr.bf16.gmra.mxu0 %v1014_v37  ;;  %479 = vmatmul.mubr.bf16.gmra.mxu1 %v1032_v38 }
  0x5e   :  { %938 = vmatprep.mubr.msk.bf16.mxu0 %vm289_vm0, %v1018_v39  ;;  %946 = vmatprep.mubr.msk.bf16.mxu1 %vm289_vm0, %v1033_v40 }
  0x65   :  { %423 = vmatmul.mubr.bf16.gmra.mxu0 %v1020_v41  ;;  %487 = vmatmul.mubr.bf16.gmra.mxu1 %v1035_v42 }
  0x66   :  { %939 = vmatprep.mubr.msk.bf16.mxu0 %vm289_vm0, %v1024_v43  ;;  %947 = vmatprep.mubr.msk.bf16.mxu1 %vm289_vm0, %v1036_v44 }
  0x6d   :  { %431 = vmatmul.mubr.bf16.gmra.mxu0 %v1026_v45  ;;  %495 = vmatmul.mubr.bf16.gmra.mxu1 %v1038_v46 }
  0xf5   :  { %v1259_v47 = vpop.f32.mrf.mxu0  ;;  %v1261_v48 = vpop.f32.mrf.mxu1 }
  0xf6   :  { %v504_v18 = vsel %vm503_vm2, %v1259_v47, 0.0 }
  0xf7   :  { %v378_v49 = vpop.f32.mrf.mxu0  ;;  %v442_v50 = vpop.f32.mrf.mxu1 }
  0xf9   :  { %v1263_v51 = vpop.f32.mrf.mxu0  ;;  %v1265_v52 = vpop.f32.mrf.mxu1 }
  0xfa   :  { %v505_v15 = vsel %vm503_vm2, %v1263_v51, 0.0 }
  0xfb   :  { %v381_v53 = vpop.f32.mrf.mxu0  ;;  %v445_v54 = vpop.f32.mrf.mxu1  ;;  %v506_v20 = vadd.f32 %v505_v15, %v504_v18 }
  0xfd   :  { %v1267_v55 = vpop.f32.mrf.mxu0  ;;  %v1269_v56 = vpop.f32.mrf.mxu1 }
  0xfe   :  { %v507_v19 = vsel %vm503_vm2, %v1267_v55, 0.0 }
  0xff   :  { %v386_v57 = vpop.f32.mrf.mxu0  ;;  %v450_v58 = vpop.f32.mrf.mxu1  ;;  %v508_v24 = vadd.f32 %v507_v19, %v506_v20 }
 0x101   :  { %v1271_v59 = vpop.f32.mrf.mxu0  ;;  %v1273_v60 = vpop.f32.mrf.mxu1 }
 0x102   :  { %v509_v23 = vsel %vm503_vm2, %v1271_v59, 0.0 }
 0x103   :  { %v389_v61 = vpop.f32.mrf.mxu0  ;;  %v453_v62 = vpop.f32.mrf.mxu1  ;;  %v510_v28 = vadd.f32 %v509_v23, %v508_v24 }
 0x105   :  { %v1275_v63 = vpop.f32.mrf.mxu0  ;;  %v1277_v0 = vpop.f32.mrf.mxu1 }
 0x106   :  { %v511_v27 = vsel %vm503_vm2, %v1275_v63, 0.0 }
 0x107   :  { %v394_v1 = vpop.f32.mrf.mxu0  ;;  %v458_v2 = vpop.f32.mrf.mxu1  ;;  %v512_v32 = vadd.f32 %v511_v27, %v510_v28 }
 0x109   :  { %v1279_v3 = vpop.f32.mrf.mxu0  ;;  %v1281_v4 = vpop.f32.mrf.mxu1 }
 0x10a   :  { %v513_v31 = vsel %vm503_vm2, %v1279_v3, 0.0 }
 0x10b   :  { %v397_v5 = vpop.f32.mrf.mxu0  ;;  %v461_v6 = vpop.f32.mrf.mxu1  ;;  %v514_v36 = vadd.f32 %v513_v31, %v512_v32 }
 0x10d   :  { %v1283_v7 = vpop.f32.mrf.mxu0  ;;  %v1285_v8 = vpop.f32.mrf.mxu1 }
 0x10e   :  { %v515_v35 = vsel %vm503_vm2, %v1283_v7, 0.0 }
 0x10f   :  { %v402_v9 = vpop.f32.mrf.mxu0  ;;  %v466_v10 = vpop.f32.mrf.mxu1  ;;  %v516_v40 = vadd.f32 %v515_v35, %v514_v36  ;;  %v535_v36 = vsel %vm503_vm2, %v1261_v48, 0.0 }
 0x111   :  { %v1287_v11 = vpop.f32.mrf.mxu0  ;;  %v1289_v12 = vpop.f32.mrf.mxu1 }
 0x112   :  { %v517_v39 = vsel %vm503_vm2, %v1287_v11, 0.0 }
 0x113   :  { %v405_v13 = vpop.f32.mrf.mxu0  ;;  %v469_v14 = vpop.f32.mrf.mxu1  ;;  %v518_v44 = vadd.f32 %v517_v39, %v516_v40  ;;  %v539_v40 = vsel %vm503_vm2, %v1269_v56, 0.0 }
 0x115   :  { %v1293_v16 = vpop.f32.mrf.mxu0  ;;  %v1295_v17 = vpop.f32.mrf.mxu1 }
 0x116   :  { %v519_v43 = vsel %vm503_vm2, %v1293_v16, 0.0 }
 0x117   :  { %v410_v21 = vpop.f32.mrf.mxu0  ;;  %v474_v22 = vpop.f32.mrf.mxu1  ;;  %v520_v50 = vadd.f32 %v519_v43, %v518_v44  ;;  %v541_v44 = vsel %vm503_vm2, %v1273_v60, 0.0 }
 0x119   :  { %v1303_v25 = vpop.f32.mrf.mxu0  ;;  %v1305_v26 = vpop.f32.mrf.mxu1 }
 0x11a   :  { %v521_v49 = vsel %vm503_vm2, %v1303_v25, 0.0 }
 0x11b   :  { %v413_v29 = vpop.f32.mrf.mxu0  ;;  %v477_v30 = vpop.f32.mrf.mxu1  ;;  %v522_v58 = vadd.f32 %v521_v49, %v520_v50  ;;  %v545_v50 = vsel %vm503_vm2, %v1281_v4, 0.0 }
 0x11d   :  { %v1311_v33 = vpop.f32.mrf.mxu0  ;;  %v1313_v34 = vpop.f32.mrf.mxu1 }
 0x11e   :  { %v523_v57 = vsel %vm503_vm2, %v1311_v33, 0.0 }
 0x11f   :  { %v418_v37 = vpop.f32.mrf.mxu0  ;;  %v482_v38 = vpop.f32.mrf.mxu1  ;;  %v524_v2 = vadd.f32 %v523_v57, %v522_v58  ;;  %v547_v58 = vsel %vm503_vm2, %v1285_v8, 0.0 }
 0x120   :  { %v537_v38 = vsel %vm503_vm2, %v1265_v52, 0.0 }
 0x121   :  { %v1319_v41 = vpop.f32.mrf.mxu0  ;;  %v1321_v42 = vpop.f32.mrf.mxu1 }
 0x122   :  { %v525_v1 = vsel %vm503_vm2, %v1319_v41, 0.0 }
 0x123   :  { %v421_v45 = vpop.f32.mrf.mxu0  ;;  %v485_v46 = vpop.f32.mrf.mxu1  ;;  %v526_v10 = vadd.f32 %v525_v1, %v524_v2  ;;  %v551_v2 = vsel %vm503_vm2, %v1295_v17, 0.0 }
 0x124   :  { %v543_v46 = vsel %vm503_vm2, %v1277_v0, 0.0 }
 0x125   :  { %v1327_v53 = vpop.f32.mrf.mxu0  ;;  %v1329_v54 = vpop.f32.mrf.mxu1 }
 0x126   :  { %v527_v9 = vsel %vm503_vm2, %v1327_v53, 0.0 }
 0x127   :  { %v426_v61 = vpop.f32.mrf.mxu0  ;;  %v490_v62 = vpop.f32.mrf.mxu1  ;;  %v528_v18 = vadd.f32 %v527_v9, %v526_v10  ;;  %v553_v10 = vsel %vm503_vm2, %v1305_v26, 0.0 }
 0x128   :  { %v549_v62 = vsel %vm503_vm2, %v1289_v12, 0.0 }
 0x129   :  { %v1335_v5 = vpop.f32.mrf.mxu0  ;;  %v1337_v6 = vpop.f32.mrf.mxu1 }
 0x12a   :  { %v529_v15 = vsel %vm503_vm2, %v1335_v5, 0.0 }
 0x12b   :  { %v429_v13 = vpop.f32.mrf.mxu0  ;;  %v493_v14 = vpop.f32.mrf.mxu1  ;;  %v530_v22 = vadd.f32 %v529_v15, %v528_v18  ;;  %v557_v18 = vsel %vm503_vm2, %v1321_v42, 0.0 }
 0x12c   :  { %v555_v14 = vsel %vm503_vm2, %v1313_v34, 0.0 }
 0x12d   :  { %v1343_v19 = vpop.f32.mrf.mxu0  ;;  %v1345_v20 = vpop.f32.mrf.mxu1 }
 0x12e   :  { %v531_v21 = vsel %vm503_vm2, %v1343_v19, 0.0 }
 0x12f   :  { %v434_v23 = vpop.f32.mrf.mxu0  ;;  %v498_v24 = vpop.f32.mrf.mxu1  ;;  %v532_v27 = vadd.f32 %v531_v21, %v530_v22  ;;  %v559_v22 = vsel %vm503_vm2, %v1329_v54, 0.0 }
 0x130   :  { %v561_v24 = vsel %vm503_vm2, %v1337_v6, 0.0 }
 0x131   :  { %v1349_v28 = vpop.f32.mrf.mxu0  ;;  %v1351_v29 = vpop.f32.mrf.mxu1 }
 0x132   :  { %v533_v30 = vsel %vm503_vm2, %v1349_v28, 0.0 }
 0x133   :  { %v534_v31 = vadd.f32 %v533_v30, %v532_v27  ;;  %v437_v32 = vpop.f32.mrf.mxu0  ;;  %v501_v35 = vpop.f32.mrf.mxu1  ;;  %v563_v30 = vsel %vm503_vm2, %v1345_v20, 0.0 }
 0x134   :  { %v565_v32 = vsel %vm503_vm2, %v1351_v29, 0.0 }
 0x135   :  { %v536_v37 = vadd.f32 %v535_v36, %v534_v31 }
 0x137   :  { %v538_v39 = vadd.f32 %v537_v38, %v536_v37 }
 0x139   :  { %v540_v43 = vadd.f32 %v539_v40, %v538_v39 }
 0x13b   :  { %v542_v45 = vadd.f32 %v541_v44, %v540_v43 }
 0x13d   :  { %v544_v49 = vadd.f32 %v543_v46, %v542_v45 }
 0x13f   :  { %v546_v57 = vadd.f32 %v545_v50, %v544_v49 }
 0x141   :  { %v548_v61 = vadd.f32 %v547_v58, %v546_v57 }
 0x143   :  { %v550_v1 = vadd.f32 %v549_v62, %v548_v61 }
 0x145   :  { %v552_v9 = vadd.f32 %v551_v2, %v550_v1 }
 0x147   :  { %v554_v13 = vadd.f32 %v553_v10, %v552_v9 }
 0x149   :  { %v556_v15 = vadd.f32 %v555_v14, %v554_v13 }
 0x14b   :  { %v558_v21 = vadd.f32 %v557_v18, %v556_v15 }
 0x14d   :  { %v560_v23 = vadd.f32 %v559_v22, %v558_v21 }
 0x14f   :  { %v562_v27 = vadd.f32 %v561_v24, %v560_v23 }
 0x151   :  { %v564_v31 = vadd.f32 %v563_v30, %v562_v27 }
 0x153   :  { %v566_v35 = vadd.f32 %v565_v32, %v564_v31 }
 0x155   :  { %v567_v36 = vrot.slane %v566_v35, 4 }
 0x157   :  { %v568_v37 = vadd.f32 %v567_v36, %v566_v35 }
 0x159   :  { %v569_v38 = vrot.slane %v568_v37, 2 }
 0x15b   :  { %v570_v39 = vadd.f32 %v569_v38, %v568_v37 }
 0x15d   :  { %v571_v40 = vrot.slane %v570_v39, 1 }
 0x15f   :  { %v572_v43 = vadd.f32 %v571_v40, %v570_v39 }
 0x161   :  { %v1387_v44 = vmul.f32 0.00390625, %v572_v43 }
 0x163   :  { %v1391_v45 = vsub.f32 %v1259_v47, %v1387_v44  ;;  %v1395_v46 = vsub.f32 %v1263_v51, %v1387_v44  ;;  %v1399_v49 = vsub.f32 %v1267_v55, %v1387_v44  ;;  %v1403_v50 = vsub.f32 %v1271_v59, %v1387_v44 }
 0x164   :  { %v1411_v47 = vsub.f32 %v1275_v63, %v1387_v44  ;;  %v1417_v55 = vsub.f32 %v1279_v3, %v1387_v44  ;;  %v1425_v2 = vsub.f32 %v1283_v7, %v1387_v44  ;;  %v1432_v3 = vsub.f32 %v1287_v11, %v1387_v44 }
 0x165   :  { %v607_v57 = vmul.f32 %v1391_v45, %v1391_v45  ;;  %v608_v58 = vmul.f32 %v1395_v46, %v1395_v46  ;;  %v609_v51 = vmul.f32 %v1399_v49, %v1399_v49  ;;  %v610_v59 = vmul.f32 %v1403_v50, %v1403_v50 }
 0x166   :  { %v611_v63 = vmul.f32 %v1411_v47, %v1411_v47  ;;  %v612_v13 = vmul.f32 %v1417_v55, %v1417_v55  ;;  %v1439_v7 = vsub.f32 %v1293_v16, %v1387_v44  ;;  %v613_v18 = vmul.f32 %v1425_v2, %v1425_v2 }
 0x167   :  { %v639_v61 = vsel %vm503_vm2, %v607_v57, 0.0  ;;  %v640_v62 = vsel %vm503_vm2, %v608_v58, 0.0  ;;  %v642_v9 = vsel %vm503_vm2, %v609_v51, 0.0  ;;  %v644_v14 = vsel %vm503_vm2, %v610_v59, 0.0 }
 0x168   :  { %v641_v1 = vadd.f32 %v640_v62, %v639_v61  ;;  %v646_v21 = vsel %vm503_vm2, %v611_v63, 0.0  ;;  %v1446_v11 = vsub.f32 %v1303_v25, %v1387_v44  ;;  %v614_v23 = vmul.f32 %v1432_v3, %v1432_v3 }
 0x169   :  { %v648_v24 = vsel %vm503_vm2, %v612_v13, 0.0  ;;  %v1453_v16 = vsub.f32 %v1311_v33, %v1387_v44  ;;  %v615_v30 = vmul.f32 %v1439_v7, %v1439_v7  ;;  %v650_v31 = vsel %vm503_vm2, %v613_v18, 0.0 }
 0x16a   :  { %v643_v10 = vadd.f32 %v642_v9, %v641_v1  ;;  %v1460_v25 = vsub.f32 %v1319_v41, %v1387_v44  ;;  %v616_v35 = vmul.f32 %v1446_v11, %v1446_v11  ;;  %v652_v36 = vsel %vm503_vm2, %v614_v23, 0.0 }
 0x16b   :  { %v1467_v33 = vsub.f32 %v1327_v53, %v1387_v44  ;;  %v617_v38 = vmul.f32 %v1453_v16, %v1453_v16  ;;  %v654_v39 = vsel %vm503_vm2, %v615_v30, 0.0  ;;  %v1474_v41 = vsub.f32 %v1335_v5, %v1387_v44 }
 0x16c   :  { %v645_v15 = vadd.f32 %v644_v14, %v643_v10  ;;  %v618_v43 = vmul.f32 %v1460_v25, %v1460_v25  ;;  %v656_v57 = vsel %vm503_vm2, %v616_v35, 0.0  ;;  %v1481_v53 = vsub.f32 %v1343_v19, %v1387_v44 }
 0x16d   :  { %v619_v51 = vmul.f32 %v1467_v33, %v1467_v33  ;;  %v658_v59 = vsel %vm503_vm2, %v617_v38, 0.0  ;;  %v1488_v5 = vsub.f32 %v1349_v28, %v1387_v44  ;;  %v620_v62 = vmul.f32 %v1474_v41, %v1474_v41 }
 0x16e   :  { %v647_v22 = vadd.f32 %v646_v21, %v645_v15  ;;  %v660_v1 = vsel %vm503_vm2, %v618_v43, 0.0  ;;  %v1495_v19 = vsub.f32 %v1261_v48, %v1387_v44  ;;  %v621_v9 = vmul.f32 %v1481_v53, %v1481_v53 }
 0x16f   :  { %v662_v10 = vsel %vm503_vm2, %v619_v51, 0.0  ;;  %v1502_v28 = vsub.f32 %v1265_v52, %v1387_v44  ;;  %v622_v14 = vmul.f32 %v1488_v5, %v1488_v5  ;;  %v664_v15 = vsel %vm503_vm2, %v620_v62, 0.0 }
 0x170   :  { %v649_v27 = vadd.f32 %v648_v24, %v647_v22  ;;  %v1509_v48 = vsub.f32 %v1269_v56, %v1387_v44  ;;  %v623_v21 = vmul.f32 %v1495_v19, %v1495_v19  ;;  %v666_v22 = vsel %vm503_vm2, %v621_v9, 0.0 }
 0x171   :  { %v1516_v52 = vsub.f32 %v1273_v60, %v1387_v44  ;;  %v624_v24 = vmul.f32 %v1502_v28, %v1502_v28  ;;  %v1523_v56 = vsub.f32 %v1277_v0, %v1387_v44  ;;  %v1530_v60 = vsub.f32 %v1281_v4, %v1387_v44 }
 0x172   :  { %v651_v32 = vadd.f32 %v650_v31, %v649_v27  ;;  %v668_v27 = vsel %vm503_vm2, %v622_v14, 0.0  ;;  %v625_v31 = vmul.f32 %v1509_v48, %v1509_v48  ;;  %v1537_v0 = vsub.f32 %v1285_v8, %v1387_v44 }
 0x173   :  { %v1544_v4 = vsub.f32 %v1289_v12, %v1387_v44  ;;  %v1551_v8 = vsub.f32 %v1295_v17, %v1387_v44  ;;  %v1558_v12 = vsub.f32 %v1305_v26, %v1387_v44  ;;  %v1565_v17 = vsub.f32 %v1313_v34, %v1387_v44 }
 0x174   :  { %v653_v37 = vadd.f32 %v652_v36, %v651_v32  ;;  %v670_v32 = vsel %vm503_vm2, %v623_v21, 0.0  ;;  %v626_v36 = vmul.f32 %v1516_v52, %v1516_v52  ;;  %v1572_v26 = vsub.f32 %v1321_v42, %v1387_v44 }
 0x175   :  { %v1579_v34 = vsub.f32 %v1329_v54, %v1387_v44  ;;  %v1586_v42 = vsub.f32 %v1337_v6, %v1387_v44  ;;  %v1593_v54 = vsub.f32 %v1345_v20, %v1387_v44  ;;  %v606_v6 = vsub.f32 %v1351_v29, %v1387_v44 }
 0x176   :  { %v655_v40 = vadd.f32 %v654_v39, %v653_v37  ;;  %v672_v37 = vsel %vm503_vm2, %v624_v24, 0.0  ;;  %v627_v39 = vmul.f32 %v1523_v56, %v1523_v56 }
 0x178   :  { %v657_v58 = vadd.f32 %v656_v57, %v655_v40  ;;  %v674_v40 = vsel %vm503_vm2, %v625_v31, 0.0  ;;  %v628_v57 = vmul.f32 %v1530_v60, %v1530_v60 }
 0x17a   :  { %v659_v61 = vadd.f32 %v658_v59, %v657_v58  ;;  %v676_v58 = vsel %vm503_vm2, %v626_v36, 0.0  ;;  %v629_v59 = vmul.f32 %v1537_v0, %v1537_v0 }
 0x17c   :  { %v661_v63 = vadd.f32 %v660_v1, %v659_v61  ;;  %v678_v61 = vsel %vm503_vm2, %v627_v39, 0.0  ;;  %v630_v1 = vmul.f32 %v1544_v4, %v1544_v4 }
 0x17e   :  { %v663_v13 = vadd.f32 %v662_v10, %v661_v63  ;;  %v680_v63 = vsel %vm503_vm2, %v628_v57, 0.0  ;;  %v631_v10 = vmul.f32 %v1551_v8, %v1551_v8  ;;  %v638_v57 = vmul.f32 %v606_v6, %v606_v6 }
 0x180   :  { %v665_v18 = vadd.f32 %v664_v15, %v663_v13  ;;  %v682_v13 = vsel %vm503_vm2, %v629_v59, 0.0  ;;  %v632_v15 = vmul.f32 %v1558_v12, %v1558_v12  ;;  %v700_v29 = vsel %vm503_vm2, %v638_v57, 0.0 }
 0x182   :  { %v667_v23 = vadd.f32 %v666_v22, %v665_v18  ;;  %v684_v18 = vsel %vm503_vm2, %v630_v1, 0.0  ;;  %v633_v22 = vmul.f32 %v1565_v17, %v1565_v17 }
 0x184   :  { %v669_v30 = vadd.f32 %v668_v27, %v667_v23  ;;  %v686_v23 = vsel %vm503_vm2, %v631_v10, 0.0  ;;  %v634_v27 = vmul.f32 %v1572_v26, %v1572_v26 }
 0x186   :  { %v671_v35 = vadd.f32 %v670_v32, %v669_v30  ;;  %v688_v30 = vsel %vm503_vm2, %v632_v15, 0.0  ;;  %v635_v32 = vmul.f32 %v1579_v34, %v1579_v34 }
 0x188   :  { %v673_v38 = vadd.f32 %v672_v37, %v671_v35  ;;  %v690_v35 = vsel %vm503_vm2, %v633_v22, 0.0  ;;  %v636_v37 = vmul.f32 %v1586_v42, %v1586_v42  ;;  %v694_v20 = vsel %vm503_vm2, %v635_v32, 0.0 }
 0x18a   :  { %v675_v43 = vadd.f32 %v674_v40, %v673_v38  ;;  %v692_v38 = vsel %vm503_vm2, %v634_v27, 0.0  ;;  %v637_v40 = vmul.f32 %v1593_v54, %v1593_v54 }
 0x18c   :  { %v677_v51 = vadd.f32 %v676_v58, %v675_v43  ;;  %v696_v58 = vsel %vm503_vm2, %v636_v37, 0.0  ;;  %v698_v59 = vsel %vm503_vm2, %v637_v40, 0.0 }
 0x18e   :  { %v679_v62 = vadd.f32 %v678_v61, %v677_v51 }
 0x190   :  { %v681_v9 = vadd.f32 %v680_v63, %v679_v62 }
 0x192   :  { %v683_v14 = vadd.f32 %v682_v13, %v681_v9 }
 0x194   :  { %v685_v21 = vadd.f32 %v684_v18, %v683_v14 }
 0x196   :  { %v687_v24 = vadd.f32 %v686_v23, %v685_v21 }
 0x198   :  { %v689_v31 = vadd.f32 %v688_v30, %v687_v24 }
 0x19a   :  { %v691_v36 = vadd.f32 %v690_v35, %v689_v31 }
 0x19c   :  { %v693_v39 = vadd.f32 %v692_v38, %v691_v36 }
 0x19e   :  { %v695_v43 = vadd.f32 %v694_v20, %v693_v39 }
 0x1a0   :  { %v697_v51 = vadd.f32 %v696_v58, %v695_v43 }
 0x1a2   :  { %v699_v61 = vadd.f32 %v698_v59, %v697_v51 }
 0x1a4   :  { %v701_v44 = vadd.f32 %v700_v29, %v699_v61 }
 0x1a6   :  { %v702_v62 = vrot.slane %v701_v44, 4 }
 0x1a8   :  { %v703_v1 = vadd.f32 %v702_v62, %v701_v44 }
 0x1aa   :  { %v704_v63 = vrot.slane %v703_v1, 2 }
 0x1ac   :  { %v705_v9 = vadd.f32 %v704_v63, %v703_v1 }
 0x1ae   :  { %v706_v10 = vrot.slane %v705_v9, 1 }
 0x1b0   :  { %v707_v13 = vadd.f32 %v706_v10, %v705_v9 }
 0x1b2   :  { %v708_v14 = vmul.f32 0.00390625, %v707_v13 }
 0x1b4   :  { %v709_v15 = vadd.f32 1e-05, %v708_v14 }
 0x1b6   :  { %1039 = vrsqrt.f32 %v709_v15 }
 0x1c3   :  { %v1040_v18 = vpop.eup %1039 }
 0x1c4   :  { %v742_v21 = vmul.f32 %v1040_v18, %v606_v6  ;;  %v711_v24 = vmul.f32 %v1040_v18, %v1391_v45  ;;  %v1612_v27 = vmul.f32 %v1040_v18, %v1395_v46  ;;  %v1615_v30 = vmul.f32 %v1040_v18, %v1399_v49 }
 0x1c5   :  { %v1618_v31 = vmul.f32 %v1040_v18, %v1403_v50  ;;  %v1621_v32 = vmul.f32 %v1040_v18, %v1411_v47  ;;  %v1624_v35 = vmul.f32 %v1040_v18, %v1417_v55  ;;  %v1627_v36 = vmul.f32 %v1040_v18, %v1425_v2 }
 0x1c6   :  { %vm774_vm3 = vcmp.ge.f32.partialorder %v742_v21, 0.0  ;;  %v806_v22 = vmul.f32 0.2, %v742_v21  ;;  %v1630_v45 = vmul.f32 %v1040_v18, %v1432_v3  ;;  %v1633_v46 = vmul.f32 %v1040_v18, %v1439_v7 }
 0x1c7   :  { %v1636_v49 = vmul.f32 %v1040_v18, %v1446_v11  ;;  %v1639_v50 = vmul.f32 %v1040_v18, %v1453_v16  ;;  %v1642_v47 = vmul.f32 %v1040_v18, %v1460_v25  ;;  %v1645_v55 = vmul.f32 %v1040_v18, %v1467_v33 }
 0x1c8   :  { %v838_v23 = vsel %vm774_vm3, %v742_v21, %v806_v22  ;;  %v1648_v2 = vmul.f32 %v1040_v18, %v1474_v41  ;;  %v1651_v3 = vmul.f32 %v1040_v18, %v1481_v53  ;;  %v1654_v7 = vmul.f32 %v1040_v18, %v1488_v5 }
 0x1c9   :  { %870 = vst.msk [vmem:[#allocation2 + $0xf8] sm:$0xff] %vm503_vm2, %v838_v23  ;;  %v1657_v11 = vmul.f32 %v1040_v18, %v1495_v19  ;;  %v1660_v16 = vmul.f32 %v1040_v18, %v1502_v28  ;;  %v1663_v25 = vmul.f32 %v1040_v18, %v1509_v48  ;;  %v1666_v33 = vmul.f32 %v1040_v18, %v1516_v52 }
 0x1ca   :  { %v1669_v41 = vmul.f32 %v1040_v18, %v1523_v56  ;;  %v1672_v53 = vmul.f32 %v1040_v18, %v1530_v60  ;;  %v1675_v5 = vmul.f32 %v1040_v18, %v1537_v0  ;;  %v1678_v19 = vmul.f32 %v1040_v18, %v1544_v4 }
 0x1cb   :  { %v1681_v28 = vmul.f32 %v1040_v18, %v1551_v8  ;;  %v1684_v48 = vmul.f32 %v1040_v18, %v1558_v12  ;;  %v1687_v52 = vmul.f32 %v1040_v18, %v1565_v17  ;;  %v1690_v56 = vmul.f32 %v1040_v18, %v1572_v26 }
 0x1cc   :  { %v1693_v60 = vmul.f32 %v1040_v18, %v1579_v34  ;;  %v1696_v0 = vmul.f32 %v1040_v18, %v1586_v42  ;;  %vm743_vm4 = vcmp.ge.f32.partialorder %v711_v24, 0.0  ;;  %vm744_vm5 = vcmp.ge.f32.partialorder %v1612_v27, 0.0 }
 0x1cd   :  { %vm745_vm6 = vcmp.ge.f32.partialorder %v1615_v30, 0.0  ;;  %vm746_vm7 = vcmp.ge.f32.partialorder %v1618_v31, 0.0  ;;  %vm747_vm8 = vcmp.ge.f32.partialorder %v1621_v32, 0.0  ;;  %vm748_vm9 = vcmp.ge.f32.partialorder %v1624_v35, 0.0 }
 0x1ce   :  { %vm749_vm10 = vcmp.ge.f32.partialorder %v1627_v36, 0.0  ;;  %vm750_vm11 = vcmp.ge.f32.partialorder %v1630_v45, 0.0  ;;  %v775_v4 = vmul.f32 0.2, %v711_v24  ;;  %v776_v8 = vmul.f32 0.2, %v1612_v27 }
 0x1cf   :  { %v1713_v12 = vmul.f32 %v1040_v18, %v1593_v54  ;;  %vm758_vm12 = vcmp.ge.f32.partialorder %v1654_v7, 0.0  ;;  %v777_v17 = vmul.f32 0.2, %v1615_v30  ;;  %v778_v26 = vmul.f32 0.2, %v1618_v31 }
 0x1d0   :  { %v779_v34 = vmul.f32 0.2, %v1621_v32  ;;  %vm763_vm15 = vcmp.ge.f32.partialorder %v1669_v41, 0.0  ;;  %vm764_vm3 = vcmp.ge.f32.partialorder %v1672_v53, 0.0  ;;  %v780_v42 = vmul.f32 0.2, %v1624_v35 }
 0x1d1   :  { %v781_v54 = vmul.f32 0.2, %v1627_v36  ;;  %v782_v6 = vmul.f32 0.2, %v1630_v45  ;;  %v807_v37 = vsel %vm743_vm4, %v711_v24, %v775_v4  ;;  %vm765_vm14 = vcmp.ge.f32.partialorder %v1675_v5, 0.0 }
 0x1d2   :  { %v783_v38 = vmul.f32 0.2, %v1633_v46  ;;  %v784_v39 = vmul.f32 0.2, %v1636_v49  ;;  %v785_v40 = vmul.f32 0.2, %v1639_v50  ;;  %v808_v20 = vsel %vm744_vm5, %v1612_v27, %v776_v8 }
 0x1d3   :  { %839 = vst.msk [vmem:[#allocation2] sm:$0xff] %vm503_vm2, %v807_v37  ;;  %vm769_vm4 = vcmp.ge.f32.partialorder %v1687_v52, 0.0  ;;  %vm770_vm13 = vcmp.ge.f32.partialorder %v1690_v56, 0.0  ;;  %vm771_vm1 = vcmp.ge.f32.partialorder %v1693_v60, 0.0  ;;  %vm772_vm0 = vcmp.ge.f32.partialorder %v1696_v0, 0.0  ;;  %840 = vst.msk [vmem:[#allocation2 + $0x8] sm:$0xff] %vm503_vm2, %v808_v20 }
 0x1d4   :  { %v786_v43 = vmul.f32 0.2, %v1642_v47  ;;  %v787_v57 = vmul.f32 0.2, %v1645_v55  ;;  %v788_v58 = vmul.f32 0.2, %v1648_v2  ;;  %v809_v51 = vsel %vm745_vm6, %v1615_v30, %v777_v17 }
 0x1d5   :  { %vm773_vm5 = vcmp.ge.f32.partialorder %v1713_v12, 0.0  ;;  %v789_v59 = vmul.f32 0.2, %v1651_v3  ;;  %v790_v61 = vmul.f32 0.2, %v1654_v7  ;;  %v810_v44 = vsel %vm746_vm7, %v1618_v31, %v778_v26  ;;  %841 = vst.msk [vmem:[#allocation2 + $0x10] sm:$0xff] %vm503_vm2, %v809_v51 }
 0x1d6   :  { %v791_v29 = vmul.f32 0.2, %v1657_v11  ;;  %v792_v62 = vmul.f32 0.2, %v1660_v16  ;;  %v793_v1 = vmul.f32 0.2, %v1663_v25  ;;  %v811_v9 = vsel %vm747_vm8, %v1621_v32, %v779_v34 }
 0x1d7   :  { %v794_v63 = vmul.f32 0.2, %v1666_v33  ;;  %842 = vst.msk [vmem:[#allocation2 + $0x18] sm:$0xff] %vm503_vm2, %v810_v44  ;;  %v795_v10 = vmul.f32 0.2, %v1669_v41  ;;  %v812_v15 = vsel %vm748_vm9, %v1624_v35, %v780_v42  ;;  %843 = vst.msk [vmem:[#allocation2 + $0x20] sm:$0xff] %vm503_vm2, %v811_v9  ;;  %v813_v23 = vsel %vm749_vm10, %v1627_v36, %v781_v54 }
 0x1d8   :  { %v796_v13 = vmul.f32 0.2, %v1672_v53  ;;  %v797_v14 = vmul.f32 0.2, %v1675_v5  ;;  %v798_v18 = vmul.f32 0.2, %v1678_v19  ;;  %v814_v31 = vsel %vm750_vm11, %v1630_v45, %v782_v6 }
 0x1d9   :  { %v799_v21 = vmul.f32 0.2, %v1681_v28  ;;  %v800_v22 = vmul.f32 0.2, %v1684_v48  ;;  %844 = vst.msk [vmem:[#allocation2 + $0x28] sm:$0xff] %vm503_vm2, %v812_v15  ;;  %845 = vst.msk [vmem:[#allocation2 + $0x30] sm:$0xff] %vm503_vm2, %v813_v23 }
 0x1da   :  { %v801_v24 = vmul.f32 0.2, %v1687_v52  ;;  %v802_v27 = vmul.f32 0.2, %v1690_v56  ;;  %v803_v30 = vmul.f32 0.2, %v1693_v60 }
 0x1db   :  { %v804_v32 = vmul.f32 0.2, %v1696_v0  ;;  %v805_v35 = vmul.f32 0.2, %v1713_v12  ;;  %vm1889_vm6 = vcmp.ge.f32.partialorder %v1633_v46, 0.0  ;;  %vm1890_vm7 = vcmp.ge.f32.partialorder %v1636_v49, 0.0 }
 0x1dc   :  { %v815_v36 = vsel %vm1889_vm6, %v1633_v46, %v783_v38  ;;  %v816_v4 = vsel %vm1890_vm7, %v1636_v49, %v784_v39  ;;  %846 = vst.msk [vmem:[#allocation2 + $0x38] sm:$0xff] %vm503_vm2, %v814_v31  ;;  %vm1891_vm8 = vcmp.ge.f32.partialorder %v1639_v50, 0.0  ;;  %vm1892_vm9 = vcmp.ge.f32.partialorder %v1642_v47, 0.0 }
 0x1dd   :  { %v817_v45 = vsel %vm1891_vm8, %v1639_v50, %v785_v40  ;;  %v818_v8 = vsel %vm1892_vm9, %v1642_v47, %v786_v43  ;;  %vm1893_vm10 = vcmp.ge.f32.partialorder %v1645_v55, 0.0  ;;  %vm1894_vm11 = vcmp.ge.f32.partialorder %v1648_v2, 0.0  ;;  %847 = vst.msk [vmem:[#allocation2 + $0x40] sm:$0xff] %vm503_vm2, %v815_v36  ;;  %848 = vst.msk [vmem:[#allocation2 + $0x48] sm:$0xff] %vm503_vm2, %v816_v4 }
 0x1de   :  { %v819_v17 = vsel %vm1893_vm10, %v1645_v55, %v787_v57  ;;  %v820_v46 = vsel %vm1894_vm11, %v1648_v2, %v788_v58  ;;  %vm1895_vm6 = vcmp.ge.f32.partialorder %v1651_v3, 0.0  ;;  %v822_v50 = vsel %vm758_vm12, %v1654_v7, %v790_v61  ;;  %849 = vst.msk [vmem:[#allocation2 + $0x50] sm:$0xff] %vm503_vm2, %v817_v45  ;;  %850 = vst.msk [vmem:[#allocation2 + $0x58] sm:$0xff] %vm503_vm2, %v818_v8 }
 0x1df   :  { %v821_v49 = vsel %vm1895_vm6, %v1651_v3, %v789_v59  ;;  %vm1896_vm7 = vcmp.ge.f32.partialorder %v1657_v11, 0.0  ;;  %vm1897_vm8 = vcmp.ge.f32.partialorder %v1660_v16, 0.0  ;;  %851 = vst.msk [vmem:[#allocation2 + $0x60] sm:$0xff] %vm503_vm2, %v819_v17  ;;  %852 = vst.msk [vmem:[#allocation2 + $0x68] sm:$0xff] %vm503_vm2, %v820_v46  ;;  %vm1898_vm9 = vcmp.ge.f32.partialorder %v1663_v25, 0.0 }
 0x1e0   :  { %v823_v47 = vsel %vm1896_vm7, %v1657_v11, %v791_v29  ;;  %v824_v55 = vsel %vm1897_vm8, %v1660_v16, %v792_v62  ;;  %v825_v2 = vsel %vm1898_vm9, %v1663_v25, %v793_v1  ;;  %vm1899_vm12 = vcmp.ge.f32.partialorder %v1666_v33, 0.0  ;;  %853 = vst.msk [vmem:[#allocation2 + $0x70] sm:$0xff] %vm503_vm2, %v821_v49  ;;  %854 = vst.msk [vmem:[#allocation2 + $0x78] sm:$0xff] %vm503_vm2, %v822_v50 }
 0x1e1   :  { %v826_v3 = vsel %vm1899_vm12, %v1666_v33, %v794_v63  ;;  %v827_v7 = vsel %vm763_vm15, %v1669_v41, %v795_v10  ;;  %v828_v11 = vsel %vm764_vm3, %v1672_v53, %v796_v13  ;;  %855 = vst.msk [vmem:[#allocation2 + $0x80] sm:$0xff] %vm503_vm2, %v823_v47  ;;  %856 = vst.msk [vmem:[#allocation2 + $0x88] sm:$0xff] %vm503_vm2, %v824_v55  ;;  %vm1900_vm10 = vcmp.ge.f32.partialorder %v1678_v19, 0.0 }
 0x1e2   :  { %v829_v16 = vsel %vm765_vm14, %v1675_v5, %v797_v14  ;;  %v830_v25 = vsel %vm1900_vm10, %v1678_v19, %v798_v18  ;;  %vm1901_vm15 = vcmp.ge.f32.partialorder %v1681_v28, 0.0  ;;  %vm1902_vm3 = vcmp.ge.f32.partialorder %v1684_v48, 0.0  ;;  %857 = vst.msk [vmem:[#allocation2 + $0x90] sm:$0xff] %vm503_vm2, %v825_v2  ;;  %858 = vst.msk [vmem:[#allocation2 + $0x98] sm:$0xff] %vm503_vm2, %v826_v3 }
 0x1e3   :  { %v831_v33 = vsel %vm1901_vm15, %v1681_v28, %v799_v21  ;;  %v832_v41 = vsel %vm1902_vm3, %v1684_v48, %v800_v22  ;;  %859 = vst.msk [vmem:[#allocation2 + $0xa0] sm:$0xff] %vm503_vm2, %v827_v7  ;;  %860 = vst.msk [vmem:[#allocation2 + $0xa8] sm:$0xff] %vm503_vm2, %v828_v11  ;;  %v833_v53 = vsel %vm769_vm4, %v1687_v52, %v801_v24 }
 0x1e4   :  { %v834_v5 = vsel %vm770_vm13, %v1690_v56, %v802_v27  ;;  %v835_v19 = vsel %vm771_vm1, %v1693_v60, %v803_v30  ;;  %v836_v28 = vsel %vm772_vm0, %v1696_v0, %v804_v32  ;;  %861 = vst.msk [vmem:[#allocation2 + $0xb0] sm:$0xff] %vm503_vm2, %v829_v16  ;;  %862 = vst.msk [vmem:[#allocation2 + $0xb8] sm:$0xff] %vm503_vm2, %v830_v25 }
 0x1e5   :  { %863 = vst.msk [vmem:[#allocation2 + $0xc0] sm:$0xff] %vm503_vm2, %v831_v33  ;;  %864 = vst.msk [vmem:[#allocation2 + $0xc8] sm:$0xff] %vm503_vm2, %v832_v41  ;;  %v837_v48 = vsel %vm773_vm5, %v1713_v12, %v805_v35 }
 0x1e6   :  { %865 = vst.msk [vmem:[#allocation2 + $0xd0] sm:$0xff] %vm503_vm2, %v833_v53  ;;  %866 = vst.msk [vmem:[#allocation2 + $0xd8] sm:$0xff] %vm503_vm2, %v834_v5 }
 0x1e7   :  { %867 = vst.msk [vmem:[#allocation2 + $0xe0] sm:$0xff] %vm503_vm2, %v835_v19  ;;  %868 = vst.msk [vmem:[#allocation2 + $0xe8] sm:$0xff] %vm503_vm2, %v836_v28 }
 0x1e8   :  { %869 = vst.msk [vmem:[#allocation2 + $0xf0] sm:$0xff] %vm503_vm2, %v837_v48 }
 0x1e9   :  { %1052 = shalt.err (!%p1049_p4)
}
 0x1ea   :  { %s1065_s15 = smov 128   ;;  %s1066_s16 = smov 8  }
 0x1eb   :  { %882 = dma.vmem_to_hbm [thread:$0]  %s877_s13, 4096, %s1888_s2, [#allocation3], %s1065_s15, %s1065_s15, %s1066_s16  }
 0x1ec   :  { %1061 = dma.done.wait [#allocation3], 4096  }
 0x1ed   :  { %1062 = vsyncadd [#allocation3], 4294963200 }
 0x1ee   :  { %886 = vsyncpa [#allocation3], 1 }

</bundles_post_ra>
